<compile_context>
chip_gen: v7x
topology: tpu7x:2x2x1
jax: 0.10.0
libtpu: 0.0.40
codegen_flags: <defaults>
</compile_context>

<pallas_src>
import jax
import jax.numpy as jnp
from jax import lax
from jax.experimental import pallas as pl
from jax.experimental.pallas import tpu as pltpu

N_FIXED_POINT_ITERS = 100  # stand-in for scipy.optimize.fsolve in rnnzero


def _rnnode_recurrence_kernel(uproj_ref, At_ref, etau_ref, entau_ref,
                              hid_ref, x_state):
    """One grid step = TB fused time steps.

    Refs (all f32):
      uproj_ref : (TB, B, H)   precomputed  W_ih u_t + (b_ih + b_hh)  for this time block
      At_ref    : (H, H)       A^T  where A = weight_hh @ diag(omega^2)
      etau_ref  : (1, H)       exp(tau)
      entau_ref : (1, H)       exp(-tau)
      hid_ref   : (TB, B, H)   hidden-state output slab for this time block
      x_state   : (B, H)       VMEM scratch, hidden state carried across grid blocks
    """
    blk = pl.program_id(0)
    At = At_ref[...]                    # (H, H) — resident weight
    e_neg_tau = entau_ref[...]          # (1, H)
    TB = uproj_ref.shape[0]

    # --- block 0 only: equilibrium initial state x0 (rnnzero) ---------------
    # TODO(synk): original uses scipy.optimize.fsolve per batch element; here we use
    # a fixed-point iteration  x <- exp(tau) * tanh(x A^T + (W_ih u0 + c)).
    @pl.when(blk == 0)
    def _():
        bu0 = uproj_ref[0]              # (B, H) == W_ih u_0 + c
        e_tau = etau_ref[...]

        def fp_body(_, x):
            pre = jnp.dot(x, At, preferred_element_type=jnp.float32) + bu0
            return e_tau * jnp.tanh(pre)

        x_state[...] = lax.fori_loop(0, N_FIXED_POINT_ITERS, fp_body,
                                     jnp.zeros_like(x_state))

    # --- TB explicit-Euler steps, state carried in registers (dt = 1.0) -----
    # TODO(synk): torchdiffeq adaptive odeint has no Pallas equivalent; fixed-step
    # explicit Euler on the integer t grid is implemented instead.
    def step_body(s, x):
        hid_ref[s] = x                  # record x_t
        pre = jnp.dot(x, At, preferred_element_type=jnp.float32) + uproj_ref[s]
        return x + (jnp.tanh(pre) - x * e_neg_tau)

    x_state[...] = lax.fori_loop(0, TB, step_body, x_state[...], unroll=True)


def rnnode_lyapunov_forward(inputdata, params, time_block=32):
    """inputdata: (B, T, >=ninput) f32.  Returns (B, T, noutput) f32."""
    weight_hh = params["weight_hh"]     # (H, H)
    weight_ih = params["weight_ih"]     # (H, ninput)
    bias_ih = params["bias_ih"]         # (H,)
    bias_hh = params["bias_hh"]         # (H,)
    tau = params["tau"]                 # (H,)
    omega = params["omega"]             # (H,)
    w_lin = params["linear_w"]          # (noutput, H)
    b_lin = params["linear_b"]          # (noutput,)

    H = weight_hh.shape[0]
    ninput = weight_ih.shape[1]
    B, T = inputdata.shape[0], inputdata.shape[1]

    # --- glue (parameter setup, eval-mode A) --------------------------------
    A = weight_hh * (omega ** 2)[None, :]           # weight_hh @ diag(omega**2)
    At = A.T                                         # (H, H)
    c = bias_ih + bias_hh                            # (H,)
    e_tau = jnp.exp(tau)[None, :]                    # (1, H)
    e_neg_tau = jnp.exp(-tau)[None, :]               # (1, H)

    u = inputdata[:, :, :ninput].astype(jnp.float32)

    # Hoisted input projection: one large MXU-friendly matmul, produced directly
    # time-major so the recurrent kernel can index time on the leading axis.
    uproj = jnp.einsum("bti,hi->tbh", u, weight_ih,
                       preferred_element_type=jnp.float32) + c[None, None, :]

    TB = min(time_block, T)
    n_blocks = pl.cdiv(T, TB)
    T_pad = n_blocks * TB
    if T_pad != T:
        uproj = jnp.pad(uproj, ((0, T_pad - T), (0, 0), (0, 0)))

    hid_tm = pl.pallas_call(
        _rnnode_recurrence_kernel,
        out_shape=jax.ShapeDtypeStruct((T_pad, B, H), jnp.float32),
        grid_spec=pltpu.PrefetchScalarGridSpec(
            num_scalar_prefetch=0,
            grid=(n_blocks,),
            in_specs=[
                pl.BlockSpec((TB, B, H), lambda b: (b, 0, 0)),
                pl.BlockSpec((H, H), lambda b: (0, 0)),
                pl.BlockSpec((1, H), lambda b: (0, 0)),
                pl.BlockSpec((1, H), lambda b: (0, 0)),
            ],
            out_specs=pl.BlockSpec((TB, B, H), lambda b: (b, 0, 0)),
            scratch_shapes=[pltpu.VMEM((B, H), jnp.float32)],
        ),
        compiler_params=pltpu.CompilerParams(
            dimension_semantics=("arbitrary",),   # sequential time recurrence
        ),
    )(uproj, At, e_tau, e_neg_tau)

    # Hoisted readout: one batched matmul over all (T, B) hidden states; the
    # time/batch layout permute is folded into the contraction.
    out = jnp.einsum("tbh,oh->bto", hid_tm[:T], w_lin,
                     preferred_element_type=jnp.float32) + b_lin[None, None, :]
    return out


def rnnode_lyapunov_reference(inputdata, params):
    """Pure-JAX reference with identical math (for a sanity check)."""
    weight_hh = params["weight_hh"]
    weight_ih = params["weight_ih"]
    c = params["bias_ih"] + params["bias_hh"]
    tau = params["tau"]
    omega = params["omega"]
    w_lin = params["linear_w"]
    b_lin = params["linear_b"]

    H = weight_hh.shape[0]
    ninput = weight_ih.shape[1]
    B = inputdata.shape[0]

    At = (weight_hh * (omega ** 2)[None, :]).T
    e_tau = jnp.exp(tau)
    e_neg_tau = jnp.exp(-tau)

    u = inputdata[:, :, :ninput].astype(jnp.float32)
    bu = jnp.einsum("bti,hi->bth", u, weight_ih) + c          # (B, T, H)

    def fp_body(_, x):
        return e_tau * jnp.tanh(x @ At + bu[:, 0])

    x0 = lax.fori_loop(0, N_FIXED_POINT_ITERS, fp_body,
                       jnp.zeros((B, H), jnp.float32))

    def step(x, bu_t):
        x_next = x + jnp.tanh(x @ At + bu_t) - x * e_neg_tau
        return x_next, x

    _, xs = lax.scan(step, x0, jnp.swapaxes(bu, 0, 1))        # (T, B, H)
    return jnp.einsum("tbh,oh->bto", xs, w_lin) + b_lin[None, None, :]


def init_params(key, ninput, nhidden, noutput):
    ks = jax.random.split(key, 8)
    bound = 1.0 / jnp.sqrt(jnp.float32(nhidden))
    uni = lambda k, shape: jax.random.uniform(k, shape, jnp.float32, -bound, bound)
    return {
        "weight_hh": uni(ks[0], (nhidden, nhidden)),
        "weight_ih": uni(ks[1], (nhidden, ninput)),
        "bias_ih": uni(ks[2], (nhidden,)),
        "bias_hh": uni(ks[3], (nhidden,)),
        # tau / omega are declared uninitialized nn.Parameters in the module;
        # initialize deterministically with small values / near-identity scaling.
        "tau": 0.1 * jax.random.normal(ks[4], (nhidden,), jnp.float32),
        "omega": 1.0 + 0.05 * jax.random.normal(ks[5], (nhidden,), jnp.float32),
        "linear_w": uni(ks[6], (noutput, nhidden)),
        "linear_b": uni(ks[7], (noutput,)),
    }


if __name__ == "__main__":
    ninput, nhidden, noutput = 4, 32, 3
    batch, nstep = 2, 8

    key = jax.random.PRNGKey(0)
    kp, kx = jax.random.split(key)
    params = init_params(kp, ninput, nhidden, noutput)
    inputdata = jax.random.normal(kx, (batch, nstep, ninput), jnp.float32)

    out = rnnode_lyapunov_forward(inputdata, params)
    out = jax.block_until_ready(out)
    assert out.shape == (batch, nstep, noutput)
    assert jnp.all(jnp.isfinite(out))

    ref = jax.block_until_ready(rnnode_lyapunov_reference(inputdata, params))
    err = float(jnp.max(jnp.abs(out - ref)))
    assert err < 1e-2, f"kernel/reference mismatch: max abs err {err}"

    print("KERNEL_OK")
</pallas_src>

<mosaic_0001>
module attributes {stable_mosaic.version = 11 : i64} {
  func.func @_rnnode_recurrence_kernel(%arg0: i32, %arg1: memref<8x2x32xf32, #tpu.memory_space<vmem>>, %arg2: memref<32x32xf32, #tpu.memory_space<vmem>>, %arg3: memref<1x32xf32, #tpu.memory_space<vmem>>, %arg4: memref<1x32xf32, #tpu.memory_space<vmem>>, %arg5: memref<8x2x32xf32, #tpu.memory_space<vmem>>, %arg6: memref<2x32xf32, #tpu.memory_space<vmem>>) attributes {dimension_semantics = [#tpu.dimension_semantics<arbitrary>], iteration_bounds = array<i64: 1>, scalar_prefetch = 0 : i64, scratch_operands = 1 : i64, tpu.core_type = #tpu.core_type<tc>, window_params = [{transform_indices = @transform_0, window_bounds = array<i64: 8, 2, 32>}, {pipeline_mode = #tpu.pipeline_mode<synchronous>, transform_indices = @transform_1, window_bounds = array<i64: 32, 32>}, {pipeline_mode = #tpu.pipeline_mode<synchronous>, transform_indices = @transform_2, window_bounds = array<i64: 1, 32>}, {pipeline_mode = #tpu.pipeline_mode<synchronous>, transform_indices = @transform_3, window_bounds = array<i64: 1, 32>}, {transform_indices = @transform_4, window_bounds = array<i64: 8, 2, 32>}]} {
    %c0 = arith.constant 0 : index
    %c0_0 = arith.constant 0 : index
    %0 = vector.load %arg2[%c0, %c0_0] : memref<32x32xf32, #tpu.memory_space<vmem>>, vector<32x32xf32>
    %c0_1 = arith.constant 0 : index
    %c0_2 = arith.constant 0 : index
    %1 = vector.load %arg4[%c0_1, %c0_2] : memref<1x32xf32, #tpu.memory_space<vmem>>, vector<1x32xf32>
    %c0_i32 = arith.constant 0 : i32
    %2 = arith.cmpi eq, %arg0, %c0_i32 : i32
    %3 = arith.extui %2 : i1 to i32
    %c0_i32_3 = arith.constant 0 : i32
    %4 = arith.cmpi ne, %3, %c0_i32_3 : i32
    scf.if %4 {
      %c0_48 = arith.constant 0 : index
      %c0_49 = arith.constant 0 : index
      %c0_50 = arith.constant 0 : index
      %119 = vector.load %arg1[%c0_48, %c0_49, %c0_50] : memref<8x2x32xf32, #tpu.memory_space<vmem>>, vector<1x2x32xf32>
      %120 = vector.shape_cast %119 : vector<1x2x32xf32> to vector<2x32xf32>
      %c0_51 = arith.constant 0 : index
      %c0_52 = arith.constant 0 : index
      %121 = vector.load %arg3[%c0_51, %c0_52] : memref<1x32xf32, #tpu.memory_space<vmem>>, vector<1x32xf32>
      %cst_53 = arith.constant 0.000000e+00 : f32
      %122 = vector.broadcast %cst_53 : f32 to vector<2x32xf32>
      %c0_i32_54 = arith.constant 0 : i32
      %c100_i32 = arith.constant 100 : i32
      %123 = arith.addi %c0_i32_54, %c100_i32 : i32
      %c1_i32_55 = arith.constant 1 : i32
      %124 = scf.for %arg7 = %c0_i32_54 to %123 step %c1_i32_55 iter_args(%arg8 = %122) -> (vector<2x32xf32>)  : i32 {
        %cst_58 = arith.constant dense<0.000000e+00> : vector<2x32xf32>
        %126 = tpu.matmul %arg8, %0, %cst_58 {dimension_numbers = #tpu.dot_dimension_numbers<[1], [0], [0], [1], [0, 0, 1, 1], [], []>} : vector<2x32xf32>, vector<32x32xf32>, vector<2x32xf32> -> vector<2x32xf32>
        %127 = arith.addf %126, %120 : vector<2x32xf32>
        %128 = math.tanh %127 : vector<2x32xf32>
        %129 = vector.broadcast %121 : vector<1x32xf32> to vector<2x32xf32>
        %130 = arith.mulf %129, %128 : vector<2x32xf32>
        scf.yield %130 : vector<2x32xf32>
      }
      %c0_56 = arith.constant 0 : index
      %c0_57 = arith.constant 0 : index
      %125 = vector.load %arg6[%c0_56, %c0_57] : memref<2x32xf32, #tpu.memory_space<vmem>>, vector<2x32xf32>
      tpu.vector_store %arg6[%c0_56, %c0_57], %124 {strides = array<i32>} : memref<2x32xf32, #tpu.memory_space<vmem>>, vector<2x32xf32>,
    } else {
    }
    %c0_4 = arith.constant 0 : index
    %c0_5 = arith.constant 0 : index
    %5 = vector.load %arg6[%c0_4, %c0_5] : memref<2x32xf32, #tpu.memory_space<vmem>>, vector<2x32xf32>
    %c0_i32_6 = arith.constant 0 : i32
    %6 = arith.index_cast %c0_i32_6 : i32 to index
    %c0_7 = arith.constant 0 : index
    %c0_8 = arith.constant 0 : index
    %7 = vector.load %arg5[%6, %c0_7, %c0_8] : memref<8x2x32xf32, #tpu.memory_space<vmem>>, vector<1x2x32xf32>
    %8 = vector.shape_cast %7 : vector<1x2x32xf32> to vector<2x32xf32>
    %9 = vector.shape_cast %5 : vector<2x32xf32> to vector<1x2x32xf32>
    tpu.vector_store %arg5[%6, %c0_7, %c0_8], %9 {strides = array<i32>} : memref<8x2x32xf32, #tpu.memory_space<vmem>>, vector<1x2x32xf32>,
    %cst = arith.constant dense<0.000000e+00> : vector<2x32xf32>
    %10 = tpu.matmul %5, %0, %cst {dimension_numbers = #tpu.dot_dimension_numbers<[1], [0], [0], [1], [0, 0, 1, 1], [], []>} : vector<2x32xf32>, vector<32x32xf32>, vector<2x32xf32> -> vector<2x32xf32>
    %11 = arith.index_cast %c0_i32_6 : i32 to index
    %c0_9 = arith.constant 0 : index
    %c0_10 = arith.constant 0 : index
    %12 = vector.load %arg1[%11, %c0_9, %c0_10] : memref<8x2x32xf32, #tpu.memory_space<vmem>>, vector<1x2x32xf32>
    %13 = vector.shape_cast %12 : vector<1x2x32xf32> to vector<2x32xf32>
    %14 = arith.addf %10, %13 : vector<2x32xf32>
    %15 = math.tanh %14 : vector<2x32xf32>
    %16 = vector.broadcast %1 : vector<1x32xf32> to vector<2x32xf32>
    %17 = arith.mulf %5, %16 : vector<2x32xf32>
    %18 = arith.subf %15, %17 : vector<2x32xf32>
    %19 = arith.addf %5, %18 : vector<2x32xf32>
    %c1_i32 = arith.constant 1 : i32
    %20 = arith.index_cast %c1_i32 : i32 to index
    %c0_11 = arith.constant 0 : index
    %c0_12 = arith.constant 0 : index
    %21 = vector.load %arg5[%20, %c0_11, %c0_12] : memref<8x2x32xf32, #tpu.memory_space<vmem>>, vector<1x2x32xf32>
    %22 = vector.shape_cast %21 : vector<1x2x32xf32> to vector<2x32xf32>
    %23 = vector.shape_cast %19 : vector<2x32xf32> to vector<1x2x32xf32>
    tpu.vector_store %arg5[%20, %c0_11, %c0_12], %23 {strides = array<i32>} : memref<8x2x32xf32, #tpu.memory_space<vmem>>, vector<1x2x32xf32>,
    %cst_13 = arith.constant dense<0.000000e+00> : vector<2x32xf32>
    %24 = tpu.matmul %19, %0, %cst_13 {dimension_numbers = #tpu.dot_dimension_numbers<[1], [0], [0], [1], [0, 0, 1, 1], [], []>} : vector<2x32xf32>, vector<32x32xf32>, vector<2x32xf32> -> vector<2x32xf32>
    %25 = arith.index_cast %c1_i32 : i32 to index
    %c0_14 = arith.constant 0 : index
    %c0_15 = arith.constant 0 : index
    %26 = vector.load %arg1[%25, %c0_14, %c0_15] : memref<8x2x32xf32, #tpu.memory_space<vmem>>, vector<1x2x32xf32>
    %27 = vector.shape_cast %26 : vector<1x2x32xf32> to vector<2x32xf32>
    %28 = arith.addf %24, %27 : vector<2x32xf32>
    %29 = math.tanh %28 : vector<2x32xf32>
    %30 = vector.broadcast %1 : vector<1x32xf32> to vector<2x32xf32>
    %31 = arith.mulf %19, %30 : vector<2x32xf32>
    %32 = arith.subf %29, %31 : vector<2x32xf32>
    %33 = arith.addf %19, %32 : vector<2x32xf32>
    %c2_i32 = arith.constant 2 : i32
    %34 = arith.index_cast %c2_i32 : i32 to index
    %c0_16 = arith.constant 0 : index
    %c0_17 = arith.constant 0 : index
    %35 = vector.load %arg5[%34, %c0_16, %c0_17] : memref<8x2x32xf32, #tpu.memory_space<vmem>>, vector<1x2x32xf32>
    %36 = vector.shape_cast %35 : vector<1x2x32xf32> to vector<2x32xf32>
    %37 = vector.shape_cast %33 : vector<2x32xf32> to vector<1x2x32xf32>
    tpu.vector_store %arg5[%34, %c0_16, %c0_17], %37 {strides = array<i32>} : memref<8x2x32xf32, #tpu.memory_space<vmem>>, vector<1x2x32xf32>,
    %cst_18 = arith.constant dense<0.000000e+00> : vector<2x32xf32>
    %38 = tpu.matmul %33, %0, %cst_18 {dimension_numbers = #tpu.dot_dimension_numbers<[1], [0], [0], [1], [0, 0, 1, 1], [], []>} : vector<2x32xf32>, vector<32x32xf32>, vector<2x32xf32> -> vector<2x32xf32>
    %39 = arith.index_cast %c2_i32 : i32 to index
    %c0_19 = arith.constant 0 : index
    %c0_20 = arith.constant 0 : index
    %40 = vector.load %arg1[%39, %c0_19, %c0_20] : memref<8x2x32xf32, #tpu.memory_space<vmem>>, vector<1x2x32xf32>
    %41 = vector.shape_cast %40 : vector<1x2x32xf32> to vector<2x32xf32>
    %42 = arith.addf %38, %41 : vector<2x32xf32>
    %43 = math.tanh %42 : vector<2x32xf32>
    %44 = vector.broadcast %1 : vector<1x32xf32> to vector<2x32xf32>
    %45 = arith.mulf %33, %44 : vector<2x32xf32>
    %46 = arith.subf %43, %45 : vector<2x32xf32>
    %47 = arith.addf %33, %46 : vector<2x32xf32>
    %c3_i32 = arith.constant 3 : i32
    %48 = arith.index_cast %c3_i32 : i32 to index
    %c0_21 = arith.constant 0 : index
    %c0_22 = arith.constant 0 : index
    %49 = vector.load %arg5[%48, %c0_21, %c0_22] : memref<8x2x32xf32, #tpu.memory_space<vmem>>, vector<1x2x32xf32>
    %50 = vector.shape_cast %49 : vector<1x2x32xf32> to vector<2x32xf32>
    %51 = vector.shape_cast %47 : vector<2x32xf32> to vector<1x2x32xf32>
    tpu.vector_store %arg5[%48, %c0_21, %c0_22], %51 {strides = array<i32>} : memref<8x2x32xf32, #tpu.memory_space<vmem>>, vector<1x2x32xf32>,
    %cst_23 = arith.constant dense<0.000000e+00> : vector<2x32xf32>
    %52 = tpu.matmul %47, %0, %cst_23 {dimension_numbers = #tpu.dot_dimension_numbers<[1], [0], [0], [1], [0, 0, 1, 1], [], []>} : vector<2x32xf32>, vector<32x32xf32>, vector<2x32xf32> -> vector<2x32xf32>
    %53 = arith.index_cast %c3_i32 : i32 to index
    %c0_24 = arith.constant 0 : index
    %c0_25 = arith.constant 0 : index
    %54 = vector.load %arg1[%53, %c0_24, %c0_25] : memref<8x2x32xf32, #tpu.memory_space<vmem>>, vector<1x2x32xf32>
    %55 = vector.shape_cast %54 : vector<1x2x32xf32> to vector<2x32xf32>
    %56 = arith.addf %52, %55 : vector<2x32xf32>
    %57 = math.tanh %56 : vector<2x32xf32>
    %58 = vector.broadcast %1 : vector<1x32xf32> to vector<2x32xf32>
    %59 = arith.mulf %47, %58 : vector<2x32xf32>
    %60 = arith.subf %57, %59 : vector<2x32xf32>
    %61 = arith.addf %47, %60 : vector<2x32xf32>
    %c4_i32 = arith.constant 4 : i32
    %62 = arith.index_cast %c4_i32 : i32 to index
    %c0_26 = arith.constant 0 : index
    %c0_27 = arith.constant 0 : index
    %63 = vector.load %arg5[%62, %c0_26, %c0_27] : memref<8x2x32xf32, #tpu.memory_space<vmem>>, vector<1x2x32xf32>
    %64 = vector.shape_cast %63 : vector<1x2x32xf32> to vector<2x32xf32>
    %65 = vector.shape_cast %61 : vector<2x32xf32> to vector<1x2x32xf32>
    tpu.vector_store %arg5[%62, %c0_26, %c0_27], %65 {strides = array<i32>} : memref<8x2x32xf32, #tpu.memory_space<vmem>>, vector<1x2x32xf32>,
    %cst_28 = arith.constant dense<0.000000e+00> : vector<2x32xf32>
    %66 = tpu.matmul %61, %0, %cst_28 {dimension_numbers = #tpu.dot_dimension_numbers<[1], [0], [0], [1], [0, 0, 1, 1], [], []>} : vector<2x32xf32>, vector<32x32xf32>, vector<2x32xf32> -> vector<2x32xf32>
    %67 = arith.index_cast %c4_i32 : i32 to index
    %c0_29 = arith.constant 0 : index
    %c0_30 = arith.constant 0 : index
    %68 = vector.load %arg1[%67, %c0_29, %c0_30] : memref<8x2x32xf32, #tpu.memory_space<vmem>>, vector<1x2x32xf32>
    %69 = vector.shape_cast %68 : vector<1x2x32xf32> to vector<2x32xf32>
    %70 = arith.addf %66, %69 : vector<2x32xf32>
    %71 = math.tanh %70 : vector<2x32xf32>
    %72 = vector.broadcast %1 : vector<1x32xf32> to vector<2x32xf32>
    %73 = arith.mulf %61, %72 : vector<2x32xf32>
    %74 = arith.subf %71, %73 : vector<2x32xf32>
    %75 = arith.addf %61, %74 : vector<2x32xf32>
    %c5_i32 = arith.constant 5 : i32
    %76 = arith.index_cast %c5_i32 : i32 to index
    %c0_31 = arith.constant 0 : index
    %c0_32 = arith.constant 0 : index
    %77 = vector.load %arg5[%76, %c0_31, %c0_32] : memref<8x2x32xf32, #tpu.memory_space<vmem>>, vector<1x2x32xf32>
    %78 = vector.shape_cast %77 : vector<1x2x32xf32> to vector<2x32xf32>
    %79 = vector.shape_cast %75 : vector<2x32xf32> to vector<1x2x32xf32>
    tpu.vector_store %arg5[%76, %c0_31, %c0_32], %79 {strides = array<i32>} : memref<8x2x32xf32, #tpu.memory_space<vmem>>, vector<1x2x32xf32>,
    %cst_33 = arith.constant dense<0.000000e+00> : vector<2x32xf32>
    %80 = tpu.matmul %75, %0, %cst_33 {dimension_numbers = #tpu.dot_dimension_numbers<[1], [0], [0], [1], [0, 0, 1, 1], [], []>} : vector<2x32xf32>, vector<32x32xf32>, vector<2x32xf32> -> vector<2x32xf32>
    %81 = arith.index_cast %c5_i32 : i32 to index
    %c0_34 = arith.constant 0 : index
    %c0_35 = arith.constant 0 : index
    %82 = vector.load %arg1[%81, %c0_34, %c0_35] : memref<8x2x32xf32, #tpu.memory_space<vmem>>, vector<1x2x32xf32>
    %83 = vector.shape_cast %82 : vector<1x2x32xf32> to vector<2x32xf32>
    %84 = arith.addf %80, %83 : vector<2x32xf32>
    %85 = math.tanh %84 : vector<2x32xf32>
    %86 = vector.broadcast %1 : vector<1x32xf32> to vector<2x32xf32>
    %87 = arith.mulf %75, %86 : vector<2x32xf32>
    %88 = arith.subf %85, %87 : vector<2x32xf32>
    %89 = arith.addf %75, %88 : vector<2x32xf32>
    %c6_i32 = arith.constant 6 : i32
    %90 = arith.index_cast %c6_i32 : i32 to index
    %c0_36 = arith.constant 0 : index
    %c0_37 = arith.constant 0 : index
    %91 = vector.load %arg5[%90, %c0_36, %c0_37] : memref<8x2x32xf32, #tpu.memory_space<vmem>>, vector<1x2x32xf32>
    %92 = vector.shape_cast %91 : vector<1x2x32xf32> to vector<2x32xf32>
    %93 = vector.shape_cast %89 : vector<2x32xf32> to vector<1x2x32xf32>
    tpu.vector_store %arg5[%90, %c0_36, %c0_37], %93 {strides = array<i32>} : memref<8x2x32xf32, #tpu.memory_space<vmem>>, vector<1x2x32xf32>,
    %cst_38 = arith.constant dense<0.000000e+00> : vector<2x32xf32>
    %94 = tpu.matmul %89, %0, %cst_38 {dimension_numbers = #tpu.dot_dimension_numbers<[1], [0], [0], [1], [0, 0, 1, 1], [], []>} : vector<2x32xf32>, vector<32x32xf32>, vector<2x32xf32> -> vector<2x32xf32>
    %95 = arith.index_cast %c6_i32 : i32 to index
    %c0_39 = arith.constant 0 : index
    %c0_40 = arith.constant 0 : index
    %96 = vector.load %arg1[%95, %c0_39, %c0_40] : memref<8x2x32xf32, #tpu.memory_space<vmem>>, vector<1x2x32xf32>
    %97 = vector.shape_cast %96 : vector<1x2x32xf32> to vector<2x32xf32>
    %98 = arith.addf %94, %97 : vector<2x32xf32>
    %99 = math.tanh %98 : vector<2x32xf32>
    %100 = vector.broadcast %1 : vector<1x32xf32> to vector<2x32xf32>
    %101 = arith.mulf %89, %100 : vector<2x32xf32>
    %102 = arith.subf %99, %101 : vector<2x32xf32>
    %103 = arith.addf %89, %102 : vector<2x32xf32>
    %c7_i32 = arith.constant 7 : i32
    %104 = arith.index_cast %c7_i32 : i32 to index
    %c0_41 = arith.constant 0 : index
    %c0_42 = arith.constant 0 : index
    %105 = vector.load %arg5[%104, %c0_41, %c0_42] : memref<8x2x32xf32, #tpu.memory_space<vmem>>, vector<1x2x32xf32>
    %106 = vector.shape_cast %105 : vector<1x2x32xf32> to vector<2x32xf32>
    %107 = vector.shape_cast %103 : vector<2x32xf32> to vector<1x2x32xf32>
    tpu.vector_store %arg5[%104, %c0_41, %c0_42], %107 {strides = array<i32>} : memref<8x2x32xf32, #tpu.memory_space<vmem>>, vector<1x2x32xf32>,
    %cst_43 = arith.constant dense<0.000000e+00> : vector<2x32xf32>
    %108 = tpu.matmul %103, %0, %cst_43 {dimension_numbers = #tpu.dot_dimension_numbers<[1], [0], [0], [1], [0, 0, 1, 1], [], []>} : vector<2x32xf32>, vector<32x32xf32>, vector<2x32xf32> -> vector<2x32xf32>
    %109 = arith.index_cast %c7_i32 : i32 to index
    %c0_44 = arith.constant 0 : index
    %c0_45 = arith.constant 0 : index
    %110 = vector.load %arg1[%109, %c0_44, %c0_45] : memref<8x2x32xf32, #tpu.memory_space<vmem>>, vector<1x2x32xf32>
    %111 = vector.shape_cast %110 : vector<1x2x32xf32> to vector<2x32xf32>
    %112 = arith.addf %108, %111 : vector<2x32xf32>
    %113 = math.tanh %112 : vector<2x32xf32>
    %114 = vector.broadcast %1 : vector<1x32xf32> to vector<2x32xf32>
    %115 = arith.mulf %103, %114 : vector<2x32xf32>
    %116 = arith.subf %113, %115 : vector<2x32xf32>
    %117 = arith.addf %103, %116 : vector<2x32xf32>
    %c8_i32 = arith.constant 8 : i32
    %c0_46 = arith.constant 0 : index
    %c0_47 = arith.constant 0 : index
    %118 = vector.load %arg6[%c0_46, %c0_47] : memref<2x32xf32, #tpu.memory_space<vmem>>, vector<2x32xf32>
    tpu.vector_store %arg6[%c0_46, %c0_47], %117 {strides = array<i32>} : memref<2x32xf32, #tpu.memory_space<vmem>>, vector<2x32xf32>,
    return
  }
  func.func @transform_0(%arg0: i32) -> (i32, i32, i32) {
    %c0_i32 = arith.constant 0 : i32
    %c0_i32_0 = arith.constant 0 : i32
    %c0_i32_1 = arith.constant 0 : i32
    return %arg0, %c0_i32, %c0_i32_0 : i32, i32, i32
  }
  func.func @transform_1(%arg0: i32) -> (i32, i32) {
    %c0_i32 = arith.constant 0 : i32
    %c0_i32_0 = arith.constant 0 : i32
    %c0_i32_1 = arith.constant 0 : i32
    return %c0_i32, %c0_i32_0 : i32, i32
  }
  func.func @transform_2(%arg0: i32) -> (i32, i32) {
    %c0_i32 = arith.constant 0 : i32
    %c0_i32_0 = arith.constant 0 : i32
    %c0_i32_1 = arith.constant 0 : i32
    return %c0_i32, %c0_i32_0 : i32, i32
  }
  func.func @transform_3(%arg0: i32) -> (i32, i32) {
    %c0_i32 = arith.constant 0 : i32
    %c0_i32_0 = arith.constant 0 : i32
    %c0_i32_1 = arith.constant 0 : i32
    return %c0_i32, %c0_i32_0 : i32, i32
  }
  func.func @transform_4(%arg0: i32) -> (i32, i32, i32) {
    %c0_i32 = arith.constant 0 : i32
    %c0_i32_0 = arith.constant 0 : i32
    %c0_i32_1 = arith.constant 0 : i32
    return %arg0, %c0_i32, %c0_i32_0 : i32, i32, i32
  }
}

</mosaic_0001>

<bundles_post_ra>
// kernel: tpu_custom_call.1
= control target key start
LH: loop header
LB: loop body
LE: loop exit
PB: predicated region body
PF: predicated region fallthrough
CT: control target
= control target key end

     0   :  { %9 = vsyncpa [#allocation4], 0  ;;  %s1343_s0 = inlined_call_operand.hbm [shape: f32[8,2,32], index: 0, kind: input, shape index: {}]   ;;  %s1344_s1 = inlined_call_operand.hbm [shape: f32[32,32], index: 1, kind: input, shape index: {}]   ;;  %s1345_s2 = inlined_call_operand.vmem [shape: f32[1,32], index: 2, kind: input, shape index: {}]   ;;  %s1346_s3 = inlined_call_operand.vmem [shape: f32[1,32], index: 3, kind: input, shape index: {}]   ;;  %s1347_s4 = inlined_call_operand.hbm [shape: f32[8,2,32], index: 4, kind: output, shape index: {}]  }
   0x1   :  { %10 = vsyncpa [#allocation7], 0 }
   0x2   :  { %11 = vsyncpa [#allocation5], 0  ;;  %s1174_s15 = smov [#allocation3]   ;;  %s1086_s19 = scalar_lea.hbm %s1343_s0, 256 }
   0x3   :  { %s17_s16 = sshll.u32 %s1174_s15, 4  ;;  %p1087_p0 = scmp.ne.s32.totalorder %s1343_s0, %s1086_s19  ;;  %s18_s16 = int_to_ptr.vmem [resolvable:$true] %s17_s16 }
   0x4   :  { %p1090_p1 = scmp.lt.u32.totalorder %s1086_s19, %s1343_s0 }
   0x6   :  { %p1092_p2 = pnand %p1090_p1, %p1087_p0 }
   0x8   :  { %1095 = shalt.err (!%p1092_p2)
}
   0x9   :  { %s1096_s24 = scalar_lea.vmem %s18_s16, 256  ;;  %p1101_p4 = scmp.lt.s32.totalorder %s18_s16, %s18_s16 }
   0xa   :  { %p1097_p3 = scmp.ne.s32.totalorder %s18_s16, %s1096_s24  ;;  %p1102_p5 = scmp.lt.s32.totalorder %s1096_s24, %s1096_s24 }
   0xc   :  { %p1103_p6 = por %p1102_p5, %p1101_p4 }
   0xe   :  { %p1104_p7 = pnand %p1103_p6, %p1097_p3 }
  0x10   :  { %1107 = shalt.err (!%p1104_p7)
}
  0x11   :  { %s1175_s25 = smov 32   ;;  %s1176_s26 = smov 2  }
  0x12   :  { %23 = dma.hbm_to_vmem [thread:$0]  %s1343_s0, 256, %s18_s16, [#allocation4], %s1175_s25, %s1175_s25, %s1176_s26  }
  0x13   :  { %s1177_s29 = smov [#allocation6]   ;;  %s1108_s7 = scalar_lea.hbm %s1344_s1, 512 }
  0x14   :  { %s29_s30 = sshll.u32 %s1177_s29, 4  ;;  %p1109_p8 = scmp.ne.s32.totalorder %s1344_s1, %s1108_s7  ;;  %s30_s30 = int_to_ptr.vmem [resolvable:$true] %s29_s30 }
  0x15   :  { %p1112_p9 = scmp.lt.u32.totalorder %s1108_s7, %s1344_s1 }
  0x17   :  { %p1114_p10 = pnand %p1112_p9, %p1109_p8 }
  0x19   :  { %1117 = shalt.err (!%p1114_p10)
}
  0x1a   :  { %s1118_s12 = scalar_lea.vmem %s30_s30, 512  ;;  %p1123_p12 = scmp.lt.s32.totalorder %s30_s30, %s30_s30 }
  0x1b   :  { %p1119_p11 = scmp.ne.s32.totalorder %s30_s30, %s1118_s12  ;;  %p1124_p13 = scmp.lt.s32.totalorder %s1118_s12, %s1118_s12 }
  0x1d   :  { %p1125_p0 = por %p1124_p13, %p1123_p12 }
  0x1f   :  { %p1126_p1 = pnand %p1125_p0, %p1119_p11 }
  0x21   :  { %1129 = shalt.err (!%p1126_p1)
}
  0x22   :  { %s1178_s0 = smov 128   ;;  %s1179_s13 = smov 8  }
  0x23   :  { %35 = dma.hbm_to_vmem [thread:$0]  %s1344_s1, 512, %s30_s30, [#allocation7], %s1178_s0, %s1178_s0, %s1179_s13  }
  0x24   :  { %1160 = dma.done.wait [#allocation4], 256  }
  0x25   :  { %1161 = vsyncadd [#allocation4], 4294967040 }
  0x26   :  { %1162 = dma.done.wait [#allocation7], 512  }
  0x27   :  { %1163 = vsyncadd [#allocation7], 4294966784  ;;  %v46_v0 = vld [vmem:[#allocation6] sm:$0xff]  ;;  %v47_v1 = vld [vmem:[#allocation6 + $0x8] sm:$0xff]  ;;  %v1166_v7 = vmov 0.0   ;;  %s1170_s1 = smov 0  }
  0x28   :  { %v48_v2 = vld [vmem:[#allocation6 + $0x10] sm:$0xff]  ;;  %v49_v3 = vld [vmem:[#allocation6 + $0x18] sm:$0xff]  ;;  %v1242_v4 = vld [vmem:[%s1346_s3] ss:$0 sm:$0xff] }
  0x29   :  { %v55_v5 = vld [vmem:[#allocation3] sm:$0x3]  ;;  %v831_v6 = vld [vmem:[%s1345_s2] ss:$0 sm:$0xff] }
  0x2a LB: > { %v1247_v8 = vpack.c.bf16 %v47_v1, %v46_v0  ;;  %v1180_v9 = vmov 0.0|0.0   ;;  %v1250_v10 = vpack.c.bf16 %v49_v3, %v48_v2  ;;  %vm1181_vm0 = vmmov 0   ;;  %s62_s1 = sadd.s32 1, %s1172_s1   ;;  %s1172_s1 = sphi %s1170_s1, %s62_s1   ;;  %v1168_v7 = vphi %v1166_v7, %v1167_v7  }
  0x2b   : > { %985 = vmatprep.subr.bf16.mxu0 %v1180_v9  ;;  %v1182_v11 = vmov 0.0   ;;  %vm64_vm1 = vcmask 261120   ;;  %p59_p2 = scmp.ge.s32.totalorder %s62_s1, 100  }
  0x2c   : > { %987 = vmatpush3.bf16.msra.mxu0 %v1247_v8  ;;  %894 = vmatprep.mubr.msk.f32.mxu0 %vm1181_vm0, %v1182_v11  ;;  %vm146_vm2 = vcmask (%p59_p2), 254976   ;;  %v1183_v17 = vmov (%p59_p2), 0.0|0.0   ;;  %vm1184_vm3 = vmmov (%p59_p2), 0   ;;  %v1185_v18 = vmov (%p59_p2), 0.0   ;;  %v151_v20 = vld [vmem:[#allocation3] sm:$0x3] (%p59_p2) }
  0x2d   : > { %988 = vmatprep.subr.bf16.mxu0 %v1180_v9  ;;  %997 = vmatprep.subr.bf16.mxu1 (%p59_p2), %v1183_v17  ;;  %v239_v28 = vld [vmem:[#allocation3 + $0x2] sm:$0x3] (%p59_p2)  ;;  %v320_v36 = vld [vmem:[#allocation3 + $0x4] sm:$0x3] (%p59_p2)  ;;  %v401_v44 = vld [vmem:[#allocation3 + $0x6] sm:$0x3] (%p59_p2) }
  0x2e   :  { %999 = vmatpush3.bf16.msra.mxu1 (%p59_p2), %v1247_v8  ;;  %916 = vmatprep.mubr.msk.f32.mxu1 (%p59_p2), %vm1184_vm3, %v1185_v18  ;;  %v482_v52 = vld [vmem:[#allocation3 + $0x8] sm:$0x3] (%p59_p2)  ;;  %v563_v60 = vld [vmem:[#allocation3 + $0xa] sm:$0x3] (%p59_p2)  ;;  %s1186_s2 = smov (%p59_p2), [#allocation8]  }
  0x2f   :  { %1000 = vmatprep.subr.bf16.mxu1 (%p59_p2), %v1183_v17  ;;  %s809_s3 = sshll.u32 (%p59_p2), %s1186_s2, 4  ;;  %s810_s3 = int_to_ptr.vmem [resolvable:$true] %s809_s3 }
  0x30   : > { %990 = vmatpush3.bf16.msra.mxu0 %v1250_v10  ;;  %s1130_s20 = scalar_lea.vmem (%p59_p2), %s810_s3, 256  ;;  %p1135_p4 = scmp.lt.s32.totalorder (%p59_p2), %s810_s3, %s810_s3 }
  0x31   :  { %991 = vmatprep.subr.bf16.mxu0 (%p59_p2), %v1183_v17  ;;  %p1131_p3 = scmp.ne.s32.totalorder (%p59_p2), %s810_s3, %s1130_s20  ;;  %p1136_p5 = scmp.lt.s32.totalorder (%p59_p2), %s1130_s20, %s1130_s20 }
  0x32   :  { %1002 = vmatpush3.bf16.msra.mxu1 (%p59_p2), %v1250_v10 }
  0x33   : > { %895 = vmatmul.mubr.msk.f32.vlgmr.msra.gmra.mrb[0].mxu0 %vm64_vm1, %v1168_v7  ;;  %1009 = vmatprep.subr.bf16.mxu1 (%p59_p2), %v1183_v17  ;;  %p1137_p6 = por (%p59_p2), %p1136_p5, %p1135_p4 }
  0x34   :  { %905 = vmatprep.mubr.msk.f32.mxu0 (%p59_p2), %vm1184_vm3, %v1185_v18  ;;  %993 = vmatpush3.bf16.msra.mxu0 (%p59_p2), %v1247_v8 }
  0x35   :  { %994 = vmatprep.subr.bf16.mxu0 (%p59_p2), %v1183_v17  ;;  %p1138_p7 = pnand (%p59_p2), %p1137_p6, %p1131_p3 }
  0x38   :  { %996 = vmatpush3.bf16.msra.mxu0 (%p59_p2), %v1250_v10 }
  0x39   :  { %1003 = vmatprep.subr.bf16.mxu0 (%p59_p2), %v1183_v17 }
 0x106   : > { %v134_v12 = vpop.f32.mrb[0].mxu0 }
 0x107   : > { %v135_v13 = vadd.f32 %v134_v12, %v55_v5  ;;  %v896_v14 = vpop.f32.mrb[1].mxu0  ;;  %v644_v5 = vld [vmem:[#allocation3 + $0xc] sm:$0x3] (%p59_p2) }
 0x109   : > { %1068 = vtanh.f32 %v135_v13 }
 0x110   :  { %61 = sbr.rel (!%p59_p2) target bundleno = 42 (0x2a), region = 69 }
 0x113   : > { %v1069_v15 = vpop.eup %1068 }
 0x114   : > { %v145_v16 = vmul.f32 %v1069_v15, %v831_v6  }
 0x116   : > { %v1167_v7 = vmov %v145_v16   ;;  %147 = vst.msk [vmem:[#allocation2] sm:$0x3] (%p59_p2), %vm146_vm2, %v145_v16 }
 0x11d   :  { %v148_v19 = vld [vmem:[#allocation2] sm:$0x3] }
 0x11e   :  { %150 = vst.msk [vmem:[#allocation8] sm:$0x3] %vm146_vm2, %v148_v19  ;;  %906 = vmatmul.mubr.msk.f32.vlgmr.msra.gmra.mrb[0].mxu0 %vm64_vm1, %v148_v19  ;;  %v233_v24 = vmul.f32 %v1242_v4, %v148_v19 }
 0x11f   :  { %1005 = vmatpush3.bf16.msra.mxu0 %v1247_v8  ;;  %927 = vmatprep.mubr.msk.f32.mxu0 %vm1184_vm3, %v1185_v18 }
 0x120   :  { %1006 = vmatprep.subr.bf16.mxu0 %v1183_v17 }
 0x123   :  { %1008 = vmatpush3.bf16.msra.mxu0 %v1250_v10 }
 0x124   :  { %1015 = vmatprep.subr.bf16.mxu0 %v1183_v17 }
 0x1f1   :  { %v222_v21 = vpop.f32.mrb[0].mxu0 }
 0x1f2   :  { %v223_v22 = vadd.f32 %v222_v21, %v151_v20  ;;  %v907_v23 = vpop.f32.mrb[1].mxu0 }
 0x1f4   :  { %1070 = vtanh.f32 %v223_v22 }
 0x1fe   :  { %v1071_v25 = vpop.eup %1070 }
 0x1ff   :  { %v234_v26 = vsub.f32 %v1071_v25, %v233_v24 }
 0x201   :  { %v235_v27 = vadd.f32 %v234_v26, %v148_v19 }
 0x203   :  { %237 = vst.msk [vmem:[#allocation8 + $0x2] sm:$0x3] %vm146_vm2, %v235_v27  ;;  %917 = vmatmul.mubr.msk.f32.vlgmr.msra.gmra.mrb[0].mxu1 %vm64_vm1, %v235_v27  ;;  %v314_v32 = vmul.f32 %v1242_v4, %v235_v27 }
 0x204   :  { %1011 = vmatpush3.bf16.msra.mxu1 %v1247_v8  ;;  %938 = vmatprep.mubr.msk.f32.mxu1 %vm1184_vm3, %v1185_v18 }
 0x205   :  { %1012 = vmatprep.subr.bf16.mxu1 %v1183_v17 }
 0x208   :  { %1014 = vmatpush3.bf16.msra.mxu1 %v1250_v10 }
 0x209   :  { %1021 = vmatprep.subr.bf16.mxu1 %v1183_v17 }
 0x2d6   :  { %v309_v29 = vpop.f32.mrb[0].mxu1 }
 0x2d7   :  { %v310_v30 = vadd.f32 %v309_v29, %v239_v28  ;;  %v918_v31 = vpop.f32.mrb[1].mxu1 }
 0x2d9   :  { %1072 = vtanh.f32 %v310_v30 }
 0x2e3   :  { %v1073_v33 = vpop.eup %1072 }
 0x2e4   :  { %v315_v34 = vsub.f32 %v1073_v33, %v314_v32 }
 0x2e6   :  { %v316_v35 = vadd.f32 %v315_v34, %v235_v27 }
 0x2e8   :  { %318 = vst.msk [vmem:[#allocation8 + $0x4] sm:$0x3] %vm146_vm2, %v316_v35  ;;  %928 = vmatmul.mubr.msk.f32.vlgmr.msra.gmra.mrb[2].mxu0 %vm64_vm1, %v316_v35  ;;  %v395_v40 = vmul.f32 %v1242_v4, %v316_v35 }
 0x2e9   :  { %1017 = vmatpush3.bf16.msra.mxu0 %v1247_v8  ;;  %949 = vmatprep.mubr.msk.f32.mxu0 %vm1184_vm3, %v1185_v18 }
 0x2ea   :  { %1018 = vmatprep.subr.bf16.mxu0 %v1183_v17 }
 0x2ed   :  { %1020 = vmatpush3.bf16.msra.mxu0 %v1250_v10 }
 0x2ee   :  { %1027 = vmatprep.subr.bf16.mxu0 %v1183_v17 }
 0x3bb   :  { %v390_v37 = vpop.f32.mrb[2].mxu0 }
 0x3bc   :  { %v391_v38 = vadd.f32 %v390_v37, %v320_v36  ;;  %v929_v39 = vpop.f32.mrb[3].mxu0 }
 0x3be   :  { %1074 = vtanh.f32 %v391_v38 }
 0x3c8   :  { %v1075_v41 = vpop.eup %1074 }
 0x3c9   :  { %v396_v42 = vsub.f32 %v1075_v41, %v395_v40 }
 0x3cb   :  { %v397_v43 = vadd.f32 %v396_v42, %v316_v35 }
 0x3cd   :  { %399 = vst.msk [vmem:[#allocation8 + $0x6] sm:$0x3] %vm146_vm2, %v397_v43  ;;  %939 = vmatmul.mubr.msk.f32.vlgmr.msra.gmra.mrb[2].mxu1 %vm64_vm1, %v397_v43  ;;  %v476_v48 = vmul.f32 %v1242_v4, %v397_v43 }
 0x3ce   :  { %1023 = vmatpush3.bf16.msra.mxu1 %v1247_v8  ;;  %960 = vmatprep.mubr.msk.f32.mxu1 %vm1184_vm3, %v1185_v18 }
 0x3cf   :  { %1024 = vmatprep.subr.bf16.mxu1 %v1183_v17 }
 0x3d2   :  { %1026 = vmatpush3.bf16.msra.mxu1 %v1250_v10 }
 0x3d3   :  { %1033 = vmatprep.subr.bf16.mxu1 %v1183_v17 }
 0x4a0   :  { %v471_v45 = vpop.f32.mrb[2].mxu1 }
 0x4a1   :  { %v472_v46 = vadd.f32 %v471_v45, %v401_v44  ;;  %v940_v47 = vpop.f32.mrb[3].mxu1 }
 0x4a3   :  { %1076 = vtanh.f32 %v472_v46 }
 0x4ad   :  { %v1077_v49 = vpop.eup %1076 }
 0x4ae   :  { %v477_v50 = vsub.f32 %v1077_v49, %v476_v48 }
 0x4b0   :  { %v478_v51 = vadd.f32 %v477_v50, %v397_v43 }
 0x4b2   :  { %480 = vst.msk [vmem:[#allocation8 + $0x8] sm:$0x3] %vm146_vm2, %v478_v51  ;;  %950 = vmatmul.mubr.msk.f32.vlgmr.msra.gmra.mrb[4].mxu0 %vm64_vm1, %v478_v51  ;;  %v557_v56 = vmul.f32 %v1242_v4, %v478_v51 }
 0x4b3   :  { %1029 = vmatpush3.bf16.msra.mxu0 %v1247_v8  ;;  %971 = vmatprep.mubr.msk.f32.mxu0 %vm1184_vm3, %v1185_v18 }
 0x4b4   :  { %1030 = vmatprep.subr.bf16.mxu0 %v1183_v17 }
 0x4b7   :  { %1032 = vmatpush3.bf16.msra.mxu0 %v1250_v10 }
 0x585   :  { %v552_v53 = vpop.f32.mrb[4].mxu0 }
 0x586   :  { %v553_v54 = vadd.f32 %v552_v53, %v482_v52  ;;  %v951_v55 = vpop.f32.mrb[5].mxu0 }
 0x588   :  { %1078 = vtanh.f32 %v553_v54 }
 0x592   :  { %v1079_v57 = vpop.eup %1078 }
 0x593   :  { %v558_v58 = vsub.f32 %v1079_v57, %v557_v56 }
 0x595   :  { %v559_v59 = vadd.f32 %v558_v58, %v478_v51 }
 0x597   :  { %561 = vst.msk [vmem:[#allocation8 + $0xa] sm:$0x3] %vm146_vm2, %v559_v59  ;;  %961 = vmatmul.mubr.msk.f32.vlgmr.msra.gmra.mrb[4].mxu1 %vm64_vm1, %v559_v59  ;;  %v638_v0 = vmul.f32 %v1242_v4, %v559_v59 }
 0x598   :  { %1035 = vmatpush3.bf16.msra.mxu1 %v1247_v8  ;;  %982 = vmatprep.mubr.msk.f32.mxu1 %vm1184_vm3, %v1185_v18 }
 0x599   :  { %1036 = vmatprep.subr.bf16.mxu1 %v1183_v17 }
 0x59c   :  { %1038 = vmatpush3.bf16.msra.mxu1 %v1250_v10 }
 0x66a   :  { %v633_v61 = vpop.f32.mrb[4].mxu1 }
 0x66b   :  { %v634_v62 = vadd.f32 %v633_v61, %v563_v60  ;;  %v962_v63 = vpop.f32.mrb[5].mxu1 }
 0x66d   :  { %1080 = vtanh.f32 %v634_v62 }
 0x677   :  { %v1081_v1 = vpop.eup %1080 }
 0x678   :  { %v639_v2 = vsub.f32 %v1081_v1, %v638_v0 }
 0x67a   :  { %v640_v3 = vadd.f32 %v639_v2, %v559_v59 }
 0x67c   :  { %642 = vst.msk [vmem:[#allocation8 + $0xc] sm:$0x3] %vm146_vm2, %v640_v3  ;;  %972 = vmatmul.mubr.msk.f32.vlgmr.msra.gmra.mrb[6].mxu0 %vm64_vm1, %v640_v3  ;;  %v719_v9 = vmul.f32 %v1242_v4, %v640_v3 }
 0x74f   :  { %v714_v6 = vpop.f32.mrb[6].mxu0 }
 0x750   :  { %v715_v7 = vadd.f32 %v714_v6, %v644_v5  ;;  %v973_v8 = vpop.f32.mrb[7].mxu0 }
 0x752   :  { %1082 = vtanh.f32 %v715_v7 }
 0x75c   :  { %v1083_v10 = vpop.eup %1082 }
 0x75d   :  { %v720_v11 = vsub.f32 %v1083_v10, %v719_v9 }
 0x75f   :  { %v721_v12 = vadd.f32 %v720_v11, %v640_v3 }
 0x761   :  { %723 = vst.msk [vmem:[#allocation8 + $0xe] sm:$0x3] %vm146_vm2, %v721_v12  ;;  %983 = vmatmul.mubr.msk.f32.vlgmr.msra.gmra.mrb[6].mxu1 %vm64_vm1, %v721_v12 }
 0x762   :  { %1141 = shalt.err (!%p1138_p7)
}
 0x763   :  { %s1142_s23 = scalar_lea.hbm %s1347_s4, 256 }
 0x764   :  { %p1143_p8 = scmp.ne.s32.totalorder %s1347_s4, %s1142_s23  ;;  %p1146_p9 = scmp.lt.u32.totalorder %s1142_s23, %s1347_s4 }
 0x766   :  { %p1148_p10 = pnand %p1146_p9, %p1143_p8 }
 0x768   :  { %1151 = shalt.err (!%p1148_p10)
}
 0x769   :  { %815 = dma.vmem_to_hbm [thread:$0]  %s810_s3, 256, %s1347_s4, [#allocation5], %s1175_s25, %s1175_s25, %s1176_s26   ;;  %v725_v13 = vld [vmem:[#allocation3 + $0xe] sm:$0x3]  ;;  %v800_v17 = vmul.f32 %v1242_v4, %v721_v12 }
 0x834   :  { %v795_v14 = vpop.f32.mrb[6].mxu1 }
 0x835   :  { %v796_v15 = vadd.f32 %v795_v14, %v725_v13  ;;  %v984_v16 = vpop.f32.mrb[7].mxu1 }
 0x837   :  { %1084 = vtanh.f32 %v796_v15 }
 0x841   :  { %v1085_v18 = vpop.eup %1084 }
 0x842   :  { %v801_v19 = vsub.f32 %v1085_v18, %v800_v17 }
 0x844   :  { %v802_v20 = vadd.f32 %v801_v19, %v721_v12 }
 0x846   :  { %803 = vst.msk [vmem:[#allocation2] sm:$0x3] %vm146_vm2, %v802_v20 }
 0x847   :  { %1164 = dma.done.wait [#allocation5], 256  }
 0x848   :  { %1165 = vsyncadd [#allocation5], 4294967040 }
 0x849   :  { %819 = vsyncpa [#allocation4], 1 }
 0x84a   :  { %820 = vsyncpa [#allocation7], 1 }
 0x84b   :  { %821 = vsyncpa [#allocation5], 1 }

</bundles_post_ra>
